<compile_context>
chip_gen: v5e
topology: v5e:2x2
jax: 0.10.0
libtpu: 0.0.40
codegen_flags: <defaults>
</compile_context>

<pallas_src>
import functools

import jax
import jax.numpy as jnp
from jax.experimental import pallas as pl
from jax.experimental.pallas import tpu as pltpu


NUM_CORES = 2   # leading "parallel" grid axis: real 2-TC parallelism on v7x,
                # plain sequential (still correct) on single-core v5e/v6e.


def _content_loss_kernel(content_ref, graph_ref, loss_ref, acc_ref, *,
                         weight, rows_valid, tile_r, sub, n_chunks, steps,
                         need_mask, unroll):
    c_id = pl.program_id(0)        # "core" split (parallel)
    i = pl.program_id(1)           # reduction steps (arbitrary)

    # init the partial-sum accumulator once per core pass
    @pl.when(i == 0)
    def _():
        acc_ref[...] = jnp.zeros_like(acc_ref)

    base_row = (c_id * steps + i) * tile_r

    def chunk(k, carry):
        r0 = pl.multiple_of(k * sub, sub)
        c = content_ref[pl.ds(r0, sub), :].astype(jnp.float32)
        g = graph_ref[pl.ds(r0, sub), :].astype(jnp.float32)
        d = c * weight - g                      # keep the scale in-kernel (VPU slack)
        dsq = d * d
        if need_mask:
            # zero rows past the valid range (edge blocks / clamped phantom blocks)
            rid = base_row + r0 + jax.lax.broadcasted_iota(jnp.int32, (sub, 1), 0)
            dsq = jnp.where(rid < rows_valid, dsq, 0.0)
        acc_ref[...] += dsq
        return carry

    jax.lax.fori_loop(0, n_chunks, chunk, 0, unroll=unroll)

    # finalize: single cross-lane reduce, only on the last grid step of this core
    @pl.when(i == pl.num_programs(1) - 1)
    def _():
        sse = jnp.sum(acc_ref[...])
        loss_ref[...] = jnp.full(loss_ref.shape, sse, dtype=loss_ref.dtype)


def content_loss_forward(content, graph_scaled, weight):
    """content: any shape/dtype; graph_scaled: same shape, already multiplied by weight
    (mirrors the module's __init__). Returns (content_out, mse_loss)."""
    assert content.shape == graph_scaled.shape
    total = content.size
    w = float(weight)
    # TODO(synk): weight is baked as a compile-time scalar; if it ever becomes a traced
    # / learnable value, pass it through SMEM (scalar prefetch) instead.

    cf = jnp.reshape(content, (-1,))          # reshape of contiguous array: no HBM copy
    gf = jnp.reshape(graph_scaled, (-1,))

    n128 = total // 128
    if n128 == 0:
        # Tiny input: a kernel launch is not worth it.
        loss = jnp.mean((cf.astype(jnp.float32) * w - gf.astype(jnp.float32)) ** 2)
        return content, loss

    # ---- lane-exact decomposition: 2D main slab (kernel) + tiny tail (plain JAX) ----
    # Largest lane width (multiple of 128, <= 2048) dividing the aligned prefix exactly,
    # so reshape to (rows, L) is a free view -> no jnp.pad / host-side copy.
    k = next(d for d in range(16, 0, -1) if n128 % d == 0)
    L = 128 * k
    rows = n128 // k
    n_main = rows * L
    tail = total - n_main                       # < 128 elements (0 for typical shapes)

    cm = cf if n_main == total else cf[:n_main]
    gm = gf if n_main == total else gf[:n_main]
    cm = cm.reshape(rows, L)
    gm = gm.reshape(rows, L)

    # ---- generation-dependent block sizing (HBM-bound streaming reduction) ----------
    kind = jax.devices()[0].device_kind.lower()
    if "v2" in kind or "v3" in kind:
        block_elems, vmem_limit = 128 * 1024, 8 * 1024 * 1024        # tiny-VMEM fallback
    elif "v5" in kind:
        block_elems, vmem_limit = 512 * 2048, 32 * 1024 * 1024       # 4 MiB f32 blocks
    elif "v6" in kind:
        block_elems, vmem_limit = 1024 * 2048, 64 * 1024 * 1024      # 8 MiB f32 blocks
    else:  # v7x (64 MiB physical VMEM) and unknown: 8 MiB blocks, conservative limit
        block_elems, vmem_limit = 1024 * 2048, 44 * 1024 * 1024

    if rows < 8:
        tile_r = sub = rows                    # block row-dim == full array dim (legal)
    else:
        tile_r = min((block_elems // L) // 8, rows // 8) * 8
        # sub-rows per accumulation chunk: ~16K f32 elems (~16 vregs) per operand,
        # chosen to divide tile_r so chunk loads never step outside the block.
        s_cap = max(1, min(2048 // L, tile_r // 8))
        s = next(d for d in range(s_cap, 0, -1) if (tile_r // 8) % d == 0)
        sub = 8 * s
    n_chunks = tile_r // sub

    grid_rows = pl.cdiv(rows, tile_r)
    steps = pl.cdiv(grid_rows, NUM_CORES)
    covered_rows = NUM_CORES * steps * tile_r
    need_mask = covered_rows != rows
    last_blk = grid_rows - 1

    if NUM_CORES * steps == grid_rows:
        in_idx = lambda c, i: (c * steps + i, 0)
    else:
        # phantom trailing blocks: clamp to a valid block; their rows are masked to 0.
        in_idx = lambda c, i: (jnp.minimum(c * steps + i, last_blk), 0)

    kernel = functools.partial(
        _content_loss_kernel,
        weight=w, rows_valid=rows, tile_r=tile_r, sub=sub, n_chunks=n_chunks,
        steps=steps, need_mask=need_mask,
        unroll=True if n_chunks <= 8 else 8)

    partials = pl.pallas_call(
        kernel,
        out_shape=jax.ShapeDtypeStruct((NUM_CORES * 8, 128), jnp.float32),
        grid_spec=pltpu.PrefetchScalarGridSpec(
            num_scalar_prefetch=0,
            grid=(NUM_CORES, steps),
            in_specs=[pl.BlockSpec((tile_r, L), in_idx),
                      pl.BlockSpec((tile_r, L), in_idx)],
            out_specs=pl.BlockSpec((8, 128), lambda c, i: (c, 0)),
            scratch_shapes=[pltpu.VMEM((sub, L), jnp.float32)],
        ),
        compiler_params=pltpu.CompilerParams(
            dimension_semantics=("parallel", "arbitrary"),
            vmem_limit_bytes=vmem_limit,
        ),
        cost_estimate=pl.CostEstimate(
            flops=4 * n_main,
            bytes_accessed=2 * n_main * content.dtype.itemsize,
            transcendentals=0),
    )(cm, gm)

    sse = jnp.sum(partials[::8, 0])            # per-core partial sums of squared error
    if tail:
        ct = cf[n_main:].astype(jnp.float32)
        gt = gf[n_main:].astype(jnp.float32)
        sse = sse + jnp.sum((ct * w - gt) ** 2)
    loss = sse / jnp.float32(total)

    # content_out = content.clone() -> identity in functional JAX: no HBM copy.
    # TODO(synk): the module's .backward() (autograd on the stored loss) has no Pallas
    # equivalent here; only the forward pass is implemented.
    return content, loss


if __name__ == "__main__":
    key = jax.random.PRNGKey(0)
    k1, k2 = jax.random.split(key)

    N, C, H, W = 2, 4, 16, 16
    weight = 0.75   # deterministic "module parameter"

    content = jax.random.normal(k1, (N, C, H, W), dtype=jnp.float32)
    graph = jax.random.normal(k2, (N, C, H, W), dtype=jnp.float32)

    # Module __init__: self.graph = graph.detach() * weight
    graph_scaled = graph * weight

    content_out, loss = content_loss_forward(content, graph_scaled, weight)
    content_out, loss = jax.block_until_ready((content_out, loss))

    # Reference (pure JAX)
    ref_loss = jnp.mean((content * weight - graph_scaled) ** 2)
    assert content_out.shape == content.shape
    assert jnp.allclose(content_out, content), "content_out must equal content (clone)"
    assert jnp.allclose(loss, ref_loss, rtol=1e-5, atol=1e-6), (loss, ref_loss)

    print("KERNEL_OK")
</pallas_src>

<mosaic_0001>
module attributes {stable_mosaic.version = 11 : i64} {
  func.func @_content_loss_kernel(%arg0: i32, %arg1: i32, %arg2: memref<1x2048xf32, #tpu.memory_space<vmem>>, %arg3: memref<1x2048xf32, #tpu.memory_space<vmem>>, %arg4: memref<8x128xf32, #tpu.memory_space<vmem>>, %arg5: memref<1x2048xf32, #tpu.memory_space<vmem>>) attributes {dimension_semantics = [#tpu.dimension_semantics<parallel>, #tpu.dimension_semantics<arbitrary>], iteration_bounds = array<i64: 2, 1>, scalar_prefetch = 0 : i64, scratch_operands = 1 : i64, tpu.core_type = #tpu.core_type<tc>, window_params = [{transform_indices = @transform_0, window_bounds = array<i64: 1, 2048>}, {transform_indices = @transform_1, window_bounds = array<i64: 1, 2048>}, {transform_indices = @transform_2, window_bounds = array<i64: 8, 128>}]} {
    %c0_i32 = arith.constant 0 : i32
    %0 = arith.cmpi eq, %arg1, %c0_i32 : i32
    %1 = arith.extui %0 : i1 to i32
    %c0_i32_0 = arith.constant 0 : i32
    %2 = arith.cmpi ne, %1, %c0_i32_0 : i32
    scf.if %2 {
      %cst_14 = arith.constant 0.000000e+00 : f32
      %32 = vector.broadcast %cst_14 : f32 to vector<1x2048xf32>
      %c0_15 = arith.constant 0 : index
      %c0_16 = arith.constant 0 : index
      %33 = vector.load %arg5[%c0_15, %c0_16] : memref<1x2048xf32, #tpu.memory_space<vmem>>, vector<1x2048xf32>
      tpu.vector_store %arg5[%c0_15, %c0_16], %32 {strides = array<i32>} : memref<1x2048xf32, #tpu.memory_space<vmem>>, vector<1x2048xf32>,
    } else {
    }
    %c1_i32 = arith.constant 1 : i32
    %3 = arith.muli %arg0, %c1_i32 : i32
    %4 = arith.addi %3, %arg1 : i32
    %c1_i32_1 = arith.constant 1 : i32
    %5 = arith.muli %4, %c1_i32_1 : i32
    %c0_i32_2 = arith.constant 0 : i32
    %c1_i32_3 = arith.constant 1 : i32
    %6 = arith.muli %c0_i32_2, %c1_i32_3 : i32
    %7 = tpu.assume_multiple %6, 1 : i32
    %8 = arith.index_cast %7 : i32 to index
    %c0 = arith.constant 0 : index
    %9 = vector.load %arg2[%8, %c0] : memref<1x2048xf32, #tpu.memory_space<vmem>>, vector<1x2048xf32>
    %10 = arith.index_cast %7 : i32 to index
    %c0_4 = arith.constant 0 : index
    %11 = vector.load %arg3[%10, %c0_4] : memref<1x2048xf32, #tpu.memory_space<vmem>>, vector<1x2048xf32>
    %cst = arith.constant 7.500000e-01 : f32
    %12 = vector.broadcast %cst : f32 to vector<1x2048xf32>
    %13 = arith.mulf %9, %12 : vector<1x2048xf32>
    %14 = arith.subf %13, %11 : vector<1x2048xf32>
    %15 = arith.mulf %14, %14 : vector<1x2048xf32>
    %16 = arith.addi %5, %7 : i32
    %17 = tpu.iota {dimensions = array<i32: 0>} : vector<1x1xi32>
    %18 = vector.broadcast %16 : i32 to vector<1x1xi32>
    %19 = arith.addi %18, %17 : vector<1x1xi32>
    %c1_i32_5 = arith.constant 1 : i32
    %20 = vector.broadcast %c1_i32_5 : i32 to vector<1x1xi32>
    %21 = arith.cmpi slt, %19, %20 : vector<1x1xi32>
    %cst_6 = arith.constant 0.000000e+00 : f32
    %22 = vector.shape_cast %21 : vector<1x1xi1> to vector<1x1xi1>
    %23 = vector.broadcast %22 : vector<1x1xi1> to vector<1x2048xi1>
    %24 = vector.broadcast %cst_6 : f32 to vector<1x2048xf32>
    %25 = arith.select %23, %15, %24 : vector<1x2048xi1>, vector<1x2048xf32>
    %c0_7 = arith.constant 0 : index
    %c0_8 = arith.constant 0 : index
    %26 = vector.load %arg5[%c0_7, %c0_8] : memref<1x2048xf32, #tpu.memory_space<vmem>>, vector<1x2048xf32>
    %27 = arith.addf %26, %25 : vector<1x2048xf32>
    %c0_9 = arith.constant 0 : index
    %c0_10 = arith.constant 0 : index
    %28 = vector.load %arg5[%c0_9, %c0_10] : memref<1x2048xf32, #tpu.memory_space<vmem>>, vector<1x2048xf32>
    tpu.vector_store %arg5[%c0_9, %c0_10], %27 {strides = array<i32>} : memref<1x2048xf32, #tpu.memory_space<vmem>>, vector<1x2048xf32>,
    %c1_i32_11 = arith.constant 1 : i32
    %c0_i32_12 = arith.constant 0 : i32
    %29 = arith.cmpi eq, %arg1, %c0_i32_12 : i32
    %30 = arith.extui %29 : i1 to i32
    %c0_i32_13 = arith.constant 0 : i32
    %31 = arith.cmpi ne, %30, %c0_i32_13 : i32
    scf.if %31 {
      %c0_14 = arith.constant 0 : index
      %c0_15 = arith.constant 0 : index
      %32 = vector.load %arg5[%c0_14, %c0_15] : memref<1x2048xf32, #tpu.memory_space<vmem>>, vector<1x2048xf32>
      %33 = vector.shape_cast %32 : vector<1x2048xf32> to vector<1x1x2048xf32>
      %cst_16 = arith.constant dense<0.000000e+00> : vector<1xf32>
      %34 = vector.multi_reduction <add>, %33, %cst_16 [1, 2] : vector<1x1x2048xf32> to vector<1xf32>
      %35 = vector.shape_cast %34 : vector<1xf32> to vector<1x1x1xf32>
      %36 = vector.extract %35[0, 0, 0] : f32 from vector<1x1x1xf32>
      %37 = vector.broadcast %36 : f32 to vector<8x128xf32>
      %c0_17 = arith.constant 0 : index
      %c0_18 = arith.constant 0 : index
      %38 = vector.load %arg4[%c0_17, %c0_18] : memref<8x128xf32, #tpu.memory_space<vmem>>, vector<8x128xf32>
      tpu.vector_store %arg4[%c0_17, %c0_18], %37 {strides = array<i32>} : memref<8x128xf32, #tpu.memory_space<vmem>>, vector<8x128xf32>,
    } else {
    }
    return
  }
  func.func @transform_0(%arg0: i32, %arg1: i32) -> (i32, i32) {
    %c1_i32 = arith.constant 1 : i32
    %0 = arith.muli %arg0, %c1_i32 : i32
    %1 = arith.addi %0, %arg1 : i32
    %c0_i32 = arith.constant 0 : i32
    %2 = arith.minsi %1, %c0_i32 : i32
    %c0_i32_0 = arith.constant 0 : i32
    %c0_i32_1 = arith.constant 0 : i32
    return %2, %c0_i32_0 : i32, i32
  }
  func.func @transform_1(%arg0: i32, %arg1: i32) -> (i32, i32) {
    %c1_i32 = arith.constant 1 : i32
    %0 = arith.muli %arg0, %c1_i32 : i32
    %1 = arith.addi %0, %arg1 : i32
    %c0_i32 = arith.constant 0 : i32
    %2 = arith.minsi %1, %c0_i32 : i32
    %c0_i32_0 = arith.constant 0 : i32
    %c0_i32_1 = arith.constant 0 : i32
    return %2, %c0_i32_0 : i32, i32
  }
  func.func @transform_2(%arg0: i32, %arg1: i32) -> (i32, i32) {
    %c0_i32 = arith.constant 0 : i32
    %c0_i32_0 = arith.constant 0 : i32
    return %arg0, %c0_i32 : i32, i32
  }
}

</mosaic_0001>

<bundles_post_ra>
// kernel: tpu_custom_call.1
= control target key start
LH: loop header
LB: loop body
LE: loop exit
PB: predicated region body
PF: predicated region fallthrough
CT: control target
= control target key end

     0   :  { %7 = vsyncpa [#allocation4], 0  ;;  %s1100_s0 = inlined_call_operand.hbm [shape: f32[1,2048], index: 0, kind: input, shape index: {}]   ;;  %s1101_s1 = inlined_call_operand.hbm [shape: f32[1,2048], index: 1, kind: input, shape index: {}]   ;;  %s1102_s2 = inlined_call_operand.hbm [shape: f32[16,128], index: 2, kind: output, shape index: {}]  }
   0x1   :  { %9 = vsyncpa [#allocation4 + $0x1], 0 }
   0x2   :  { %10 = vsyncpa [#allocation7], 0 }
   0x3   :  { %12 = vsyncpa [#allocation7 + $0x1], 0 }
   0x4   :  { %13 = vsyncpa [#allocation5], 0 }
   0x5   :  { %15 = vsyncpa [#allocation5 + $0x1], 0  ;;  %s866_s9 = smov 0   ;;  %s868_s10 = smov 0  }
   0x6   :  { %s870_s11 = smov 0   ;;  %s872_s12 = smov 0  }
   0x7   :  { %s874_s13 = smov 0   ;;  %s876_s14 = smov 0  }
   0x8   :  { %s878_s15 = smov 0   ;;  %s880_s16 = smov 0  }
   0x9 LB: > { %s571_s17 = sadd.s32 4294967295, %s847_s16   ;;  %s572_s18 = sadd.s32 4294967294, %s847_s16   ;;  %s847_s16 = sphi %s880_s16, %s21_s16   ;;  %s843_s15 = sphi %s878_s15, %s1114_s15   ;;  %s839_s14 = sphi %s876_s14, %s1113_s14   ;;  %s835_s13 = sphi %s874_s13, %s1090_s13   ;;  %s831_s12 = sphi %s872_s12, %s1112_s12   ;;  %s827_s11 = sphi %s870_s11, %s1111_s11   ;;  %s823_s10 = sphi %s868_s10, %s1110_s10   ;;  %s819_s9 = sphi %s866_s9, %s1109_s9  }
   0xa   : > { %s33_s19 = sadd.s32 1, %s843_s15  ;;  %p816_p1 = scmp.ne.s32.totalorder %s835_s13, 0 }
   0xb   : > { %p35_p0 = scmp.ge.s32.totalorder %s33_s19, 2  ;;  %p54_p2 = scmp.eq.s32.totalorder %s847_s16, 0 }
   0xc   : > { %p59_p3 = scmp.ne.s32.totalorder %s835_s13, %s831_s12  ;;  %p60_p5 = scmp.eq.s32.totalorder %s571_s17, 0 }
   0xd   : > { %s1116_s19 = smov (%p35_p0, %s33_s19), 0  ;;  %p912_p4 = por %p816_p1, %p54_p2 }
   0xe   : > { %p916_p6 = por %p60_p5, %p59_p3  ;;  %s101_s22 = ssub.s32 %s843_s15, %s1116_s19 }
   0xf   : > { %p102_p7 = scmp.eq.s32.totalorder %s101_s22, 0  ;;  %s104_s23 = sadd.s32 1, %s827_s11 }
  0x10   : > { %p114_p8 = scmp.ne.s32.totalorder %s827_s11, %s823_s10  ;;  %p115_p9 = scmp.eq.s32.totalorder %s571_s17, 1 }
  0x11   : > { %s924_s24 = scalar_select %p102_p7, %s827_s11, %s104_s23  }
  0x12   : > { %p120_p10 = scmp.ne.s32.totalorder %s823_s10, %s819_s9  ;;  %p121_p11 = scmp.eq.s32.totalorder %s572_s18, 1 }
  0x13   : > { %p930_p12 = por %p115_p9, %p114_p8  ;;  %p574_p13 = scmp.ge.s32.totalorder %s847_s16, 2 }
  0x14   : > { %p935_p0 = por %p121_p11, %p120_p10  ;;  %p606_p1 = scmp.lt.s32.totalorder %s847_s16, 2 }
  0x15   : > { %s154_s29 = sshll.u32 %s1100_s0, 4  ;;  %s849_s30 = smov [#allocation3]   ;;  %s155_s29 = int_to_ptr.hbm [resolvable:$true] %s154_s29 }
  0x16   : > { %s156_s3 = sshll.u32 %s849_s30, 4  ;;  %p945_p2 = pnand %p606_p1, %p912_p4  ;;  %s157_s3 = int_to_ptr.vmem [resolvable:$true] %s156_s3 }
  0x17   : > { %p579_p3 = scmp.ge.s32.totalorder %s847_s16, 1  ;;  %p183_p5 = scmp.lt.s32.totalorder %s847_s16, 3 }
  0x18   : > { %s680_s5 = sshra.s32 %s155_s29, 4  ;;  %p684_p8 = pneg %p945_p2  ;;  %s681_s5 = int_to_ptr.hbm [resolvable:$true] %s680_s5 }
  0x19   : > { %s682_s6 = scalar_lea.hbm %s681_s5, 16  ;;  %s687_s12 = scalar_lea.hbm %s1100_s0, 16 }
  0x1a   : > { %p683_p7 = scmp.ne.s32.totalorder %s681_s5, %s682_s6  ;;  %p689_p4 = scmp.lt.s32.totalorder %s687_s12, %s682_s6 }
  0x1c   : > { %p685_p9 = pnand %p684_p8, %p683_p7 }
  0x1e   : > { %p686_p10 = pneg %p685_p9 }
  0x20   : > { %p691_p11 = pnand %p689_p4, %p686_p10 }
  0x22   : > { %694 = shalt.err (!%p691_p11)
}
  0x23   : > { %598 = dma.hbm_to_vmem [thread:$0]  (!%p945_p2), %s155_s29, 256, %s157_s3, [#allocation4]  }
  0x24   : > { %p965_p1 = pnand %p579_p3, %p183_p5  ;;  %s176_s22 = sshll.u32 %s1101_s1, 4  ;;  %s177_s22 = int_to_ptr.hbm [resolvable:$true] %s176_s22 }
  0x25   : > { %s850_s23 = smov [#allocation6]   ;;  %s710_s28 = sshra.s32 %s177_s22, 4  ;;  %s711_s28 = int_to_ptr.hbm [resolvable:$true] %s710_s28 }
  0x26   : > { %s178_s27 = sshll.u32 %s850_s23, 4  ;;  %s712_s30 = scalar_lea.hbm %s711_s28, 16  ;;  %s179_s27 = int_to_ptr.vmem [resolvable:$true] %s178_s27 }
  0x27   : > { %p713_p7 = scmp.ne.s32.totalorder %s711_s28, %s712_s30  ;;  %s717_s5 = scalar_lea.hbm %s1101_s1, 16 }
  0x28   : > { %p719_p3 = scmp.lt.s32.totalorder %s717_s5, %s712_s30 }
  0x29   : > { %p715_p9 = pnand %p713_p7, %p684_p8 }
  0x2b   : > { %p716_p10 = pneg %p715_p9 }
  0x2d   : > { %p721_p5 = pnand %p719_p3, %p716_p10 }
  0x2f   : > { %724 = shalt.err (!%p721_p5)
}
  0x30   : > { %601 = dma.hbm_to_vmem [thread:$0]  (!%p945_p2), %s177_s22, 256, %s179_s27, [#allocation7]  }
  0x31   : > { %187 = sbr.rel (%p965_p1) target bundleno = 292 (0x124), region = 28  ;;  %s189_s6 = sand.u32 (!%p965_p1), 1, %s835_s13  }
  0x32   : > { %s580_s7 = sshll.u32 (!%p965_p1), %s189_s6, 4  ;;  %s190_s8 = scalar_lea.sflag (!%p965_p1), [#allocation4], %s189_s6 }
  0x33   : > { %s193_s12 = scalar_lea.vmem (!%p965_p1), [#allocation3], %s580_s7 }
  0x36   : > { %805 = dma.done.wait (%p916_p6), %s190_s8, 256  }
  0x37   : > { %807 = vsyncadd (%p916_p6), %s190_s8, 4294967040  ;;  %s200_s18 = scalar_lea.sflag [#allocation7], %s189_s6  ;;  %s203_s20 = scalar_lea.vmem [#allocation6], %s580_s7 }
  0x38   : > { %809 = dma.done.wait (%p916_p6), %s200_s18, 256  }
  0x39   : > { %811 = vsyncadd (%p916_p6), %s200_s18, 4294967040  ;;  %v257_v0 = vlaneseq  ;;  %v245_v1 = vld [vmem:[%s193_s12] sm:$0xff]  ;;  %v246_v3 = vld [vmem:[%s193_s12 + $0x8] sm:$0xff]  ;;  %v259_v8 = vstv %s839_s14  ;;  %vm346_vm0 = vcmask 1040384   ;;  %vm348_vm1 = vcmask 1042434   ;;  %s227_s21 = sand.u32 1, %s823_s10  }
  0x3a   : > { %v248_v2 = vld [vmem:[%s203_s20] sm:$0xff]  ;;  %v250_v4 = vmul.f32 0.75, %v245_v1  ;;  %v249_v5 = vld [vmem:[%s203_s20 + $0x8] sm:$0xff]  ;;  %v251_v6 = vmul.f32 0.75, %v246_v3  ;;  %vm350_vm2 = vcmask 1041408   ;;  %vm352_vm3 = vcmask 1044484  }
  0x3b   : > { %v258_v7 = vshrl.u32 %v257_v0, 7  ;;  %vm354_vm5 = vcmask 1046534   ;;  %vm356_vm6 = vcmask 1045508   ;;  %vm358_vm7 = vcmask 1043456   ;;  %s582_s4 = sshll.u32 %s227_s21, 3  ;;  %s584_s17 = sshll.u32 %s839_s14, 3 }
  0x3c   : > { %v252_v9 = vsub.f32 %v250_v4, %v248_v2  ;;  %v253_v10 = vsub.f32 %v251_v6, %v249_v5  ;;  %s465_s27 = scalar_lea.hbm %s1102_s2, %s584_s17  ;;  %s229_s28 = scalar_lea.vmem [#allocation8], %s582_s4 }
  0x3d   : > { %v992_v12 = vadd.s32 %v259_v8, %v258_v7  ;;  %s467_s30 = sshll.u32 %s229_s28, 4  ;;  %s469_s29 = sshll.u32 %s465_s27, 4  ;;  %s468_s30 = int_to_ptr.vmem [resolvable:$true] %s467_s30  ;;  %s470_s29 = int_to_ptr.hbm [resolvable:$true] %s469_s29 }
  0x3e   : > { %v254_v11 = vmul.f32 %v252_v9, %v252_v9  ;;  %v255_v13 = vmul.f32 %v253_v10, %v253_v10  ;;  %s455_s5 = scalar_lea.sflag [#allocation5], %s227_s21  ;;  %s754_s6 = sshra.s32 %s470_s29, 4  ;;  %s755_s6 = int_to_ptr.hbm [resolvable:$true] %s754_s6 }
  0x3f   : > { %vm261_vm4 = vcmp.lt.s32.totalorder %v992_v12, 1  ;;  %s756_s7 = scalar_lea.hbm %s755_s6, 8  ;;  %s760_s12 = scalar_lea.hbm %s1102_s2, 16 }
  0x40   : > { %v267_v14 = vperm.slane %v254_v11, 1  ;;  %v268_v15 = vperm.slane %v254_v11, 2  ;;  %v269_v16 = vperm.slane %v254_v11, 3  ;;  %v270_v17 = vperm.slane %v254_v11, 4  ;;  %p757_p6 = scmp.ne.s32.totalorder %s755_s6, %s756_s7  ;;  %p761_p4 = scmp.lt.s32.totalorder %s755_s6, %s1102_s2 }
  0x41   : > { %v271_v18 = vperm.slane %v254_v11, 5  ;;  %v272_v19 = vperm.slane %v254_v11, 6  ;;  %v273_v20 = vperm.slane %v254_v11, 7  ;;  %v266_v21 = vperm.slane %v254_v11, 0  ;;  %p762_p11 = scmp.lt.s32.totalorder %s760_s12, %s756_s7 }
  0x42   : > { %v275_v22 = vperm.slane %v255_v13, 1  ;;  %v276_v23 = vperm.slane %v255_v13, 2  ;;  %v277_v24 = vperm.slane %v255_v13, 3  ;;  %v278_v25 = vperm.slane %v255_v13, 4  ;;  %p758_p2 = pnand %p757_p6, %p930_p12 }
  0x43   : > { %v299_v26 = vsel %vm261_vm4, %v267_v14, 0.0  ;;  %v300_v27 = vsel %vm261_vm4, %v268_v15, 0.0  ;;  %v301_v28 = vsel %vm261_vm4, %v269_v16, 0.0  ;;  %v302_v29 = vsel %vm261_vm4, %v270_v17, 0.0  ;;  %p763_p1 = por %p762_p11, %p761_p4 }
  0x44   : > { %v279_v30 = vperm.slane %v255_v13, 5  ;;  %v303_v31 = vsel %vm261_vm4, %v271_v18, 0.0  ;;  %v304_v32 = vsel %vm261_vm4, %v272_v19, 0.0  ;;  %v305_v33 = vsel %vm261_vm4, %v273_v20, 0.0  ;;  %p759_p8 = pneg %p758_p2 }
  0x45   : > { %v274_v34 = vperm.slane %v255_v13, 0  ;;  %v280_v35 = vperm.slane %v255_v13, 6  ;;  %v281_v36 = vperm.slane %v255_v13, 7  ;;  %v298_v37 = vsel %vm261_vm4, %v266_v21, 0.0 }
  0x46   : > { %v332_v38 = vrot.slane %v299_v26, 7  ;;  %v333_v39 = vrot.slane %v300_v27, 6  ;;  %v334_v40 = vrot.slane %v301_v28, 5  ;;  %v335_v41 = vrot.slane %v302_v29, 4  ;;  %p764_p7 = pnand %p763_p1, %p759_p8 }
  0x47   : > { %v307_v42 = vsel %vm261_vm4, %v275_v22, 0.0  ;;  %v336_v43 = vrot.slane %v303_v31, 3  ;;  %v337_v44 = vrot.slane %v304_v32, 2  ;;  %v338_v45 = vrot.slane %v305_v33, 1 }
  0x48   : > { %v308_v46 = vsel %vm261_vm4, %v276_v23, 0.0  ;;  %v309_v47 = vsel %vm261_vm4, %v277_v24, 0.0  ;;  %v310_v48 = vsel %vm261_vm4, %v278_v25, 0.0  ;;  %v311_v49 = vsel %vm261_vm4, %v279_v30, 0.0 }
  0x49   : > { %v312_v50 = vsel %vm261_vm4, %v280_v35, 0.0  ;;  %v313_v51 = vsel %vm261_vm4, %v281_v36, 0.0  ;;  %v347_v52 = vsel %vm346_vm0, %v298_v37, %v332_v38  ;;  %v349_v53 = vsel %vm348_vm1, %v333_v39, %v334_v40 }
  0x4a   : > { %v339_v54 = vrot.slane %v307_v42, 7  ;;  %v351_v55 = vsel %vm350_vm2, %v347_v52, %v349_v53  ;;  %v353_v56 = vsel %vm352_vm3, %v335_v41, %v336_v43  ;;  %v355_v57 = vsel %vm354_vm5, %v337_v44, %v338_v45 }
  0x4b   : > { %v340_v58 = vrot.slane %v308_v46, 6  ;;  %v341_v59 = vrot.slane %v309_v47, 5  ;;  %v342_v60 = vrot.slane %v310_v48, 4  ;;  %v357_v61 = vsel %vm356_vm6, %v353_v56, %v355_v57 }
  0x4c   : > { %v343_v62 = vrot.slane %v311_v49, 3  ;;  %v344_v63 = vrot.slane %v312_v50, 2  ;;  %v345_v0 = vrot.slane %v313_v51, 1  ;;  %v359_v1 = vsel %vm358_vm7, %v351_v55, %v357_v61 }
  0x4d   : > { %v306_v2 = vsel %vm261_vm4, %v274_v34, 0.0  ;;  %v380_v3 = vperm.slane %v359_v1, 0  ;;  %v381_v4 = vperm.slane %v359_v1, 1  ;;  %v382_v5 = vperm.slane %v359_v1, 2 }
  0x4e   : > { %v383_v6 = vperm.slane %v359_v1, 3  ;;  %v360_v7 = vsel %vm346_vm0, %v306_v2, %v339_v54  ;;  %v361_v8 = vsel %vm348_vm1, %v340_v58, %v341_v59  ;;  %v363_v9 = vsel %vm352_vm3, %v342_v60, %v343_v62 }
  0x4f   : > { %v364_v10 = vsel %vm354_vm5, %v344_v63, %v345_v0  ;;  %v384_v11 = vperm.slane %v359_v1, 4  ;;  %v412_v13 = vsel %vm346_vm0, %v380_v3, 0.0  ;;  %v413_v14 = vsel %vm346_vm0, %v381_v4, 0.0 }
  0x50   : > { %v415_v12 = vsel %vm346_vm0, %v382_v5, 0.0  ;;  %v414_v15 = vadd.f32 %v413_v14, %v412_v13  ;;  %v362_v16 = vsel %vm350_vm2, %v360_v7, %v361_v8  ;;  %v365_v17 = vsel %vm356_vm6, %v363_v9, %v364_v10 }
  0x51   : > { %v385_v18 = vperm.slane %v359_v1, 5  ;;  %v417_v19 = vsel %vm346_vm0, %v383_v6, 0.0  ;;  %v386_v21 = vperm.slane %v359_v1, 6  ;;  %v419_v22 = vsel %vm346_vm0, %v384_v11, 0.0 }
  0x52   : > { %v416_v20 = vadd.f32 %v415_v12, %v414_v15  ;;  %v366_v23 = vsel %vm358_vm7, %v362_v16, %v365_v17  ;;  %v387_v25 = vperm.slane %v359_v1, 7 }
  0x53   : > { %v421_v26 = vsel %vm346_vm0, %v385_v18, 0.0  ;;  %v388_v28 = vperm.slane %v366_v23, 0  ;;  %v423_v29 = vsel %vm346_vm0, %v386_v21, 0.0  ;;  %v389_v31 = vperm.slane %v366_v23, 1 }
  0x54   : > { %v418_v24 = vadd.f32 %v417_v19, %v416_v20  ;;  %v425_v32 = vsel %vm346_vm0, %v387_v25, 0.0  ;;  %v390_v34 = vperm.slane %v366_v23, 2  ;;  %v391_v37 = vperm.slane %v366_v23, 3 }
  0x55   : > { %v427_v35 = vsel %vm346_vm0, %v388_v28, 0.0  ;;  %v429_v38 = vsel %vm346_vm0, %v389_v31, 0.0  ;;  %v392_v40 = vperm.slane %v366_v23, 4  ;;  %v393_v43 = vperm.slane %v366_v23, 5 }
  0x56   : > { %v420_v27 = vadd.f32 %v419_v22, %v418_v24  ;;  %v431_v41 = vsel %vm346_vm0, %v390_v34, 0.0  ;;  %v433_v44 = vsel %vm346_vm0, %v391_v37, 0.0  ;;  %v394_v46 = vperm.slane %v366_v23, 6 }
  0x57   : > { %v435_v47 = vsel %vm346_vm0, %v392_v40, 0.0  ;;  %v395_v49 = vperm.slane %v366_v23, 7  ;;  %v437_v50 = vsel %vm346_vm0, %v393_v43, 0.0 }
  0x58   : > { %v422_v30 = vadd.f32 %v421_v26, %v420_v27  ;;  %v439_v52 = vsel %vm346_vm0, %v394_v46, 0.0 }
  0x59   : > { %v441_v54 = vsel %vm346_vm0, %v395_v49, 0.0 }
  0x5a   : > { %v424_v33 = vadd.f32 %v423_v29, %v422_v30 }
  0x5c   : > { %v426_v36 = vadd.f32 %v425_v32, %v424_v33 }
  0x5e   : > { %v428_v39 = vadd.f32 %v427_v35, %v426_v36 }
  0x60   : > { %v430_v42 = vadd.f32 %v429_v38, %v428_v39 }
  0x62   : > { %v432_v45 = vadd.f32 %v431_v41, %v430_v42 }
  0x64   : > { %v434_v48 = vadd.f32 %v433_v44, %v432_v45 }
  0x66   : > { %v436_v51 = vadd.f32 %v435_v47, %v434_v48 }
  0x68   : > { %v438_v53 = vadd.f32 %v437_v50, %v436_v51 }
  0x6a   : > { %v440_v55 = vadd.f32 %v439_v52, %v438_v53 }
  0x6c   : > { %v442_v56 = vadd.f32 %v441_v54, %v440_v55 }
  0x6e   : > { %443 = vadd.xlane.f32.xlu0 %v442_v56 }
  0xe1   : > { %v444_v57 = vpop.xlane.xlu0 %443 }
  0xe2   : > { %v445_v58 = vrot.slane %v444_v57, 4 }
  0xe4   : > { %v446_v59 = vadd.f32 %v445_v58, %v444_v57 }
  0xe6   : > { %v447_v60 = vrot.slane %v446_v59, 2 }
  0xe8   : > { %v448_v61 = vadd.f32 %v447_v60, %v446_v59 }
  0xea   : > { %v449_v62 = vrot.slane %v448_v61, 1 }
  0xec   : > { %v450_v63 = vadd.f32 %v449_v62, %v448_v61 }
  0xee   : > { %587 = vpush %v450_v63 }
 0x11f   : > { %s588_s3 = spop %587 }
 0x120   : > { %v452_v0 = vstv %s588_s3 }
 0x121   : > { %453 = vst [vmem:[%s229_s28] sm:$0xff] %v452_v0 }
 0x122   : > { %767 = shalt.err (!%p764_p7)
}
 0x123   : > { %593 = dma.vmem_to_hbm [thread:$0]  (%p930_p12), %s468_s30, 128, %s470_s29, %s455_s5  }
 0x124 PF: > { %s481_s21 = sand.u32 1, %s819_s9   ;;  %p603_p9 = pnand %p574_p13, %p935_p0 }
 0x125   : > { %s482_s4 = scalar_lea.sflag [#allocation5], %s481_s21 }
 0x126   : > { %p604_p10 = pneg %p603_p9 }
 0x128   : > { %813 = dma.done.wait (%p604_p10), %s482_s4, 128  }
 0x129   : > { %815 = vsyncadd (%p604_p10), %s482_s4, 4294967168  ;;  %s21_s16 = sadd.s32 1, %s847_s16   ;;  %s1109_s9 = smov %s823_s10 }
 0x12a   : > { %p18_p3 = scmp.ge.s32.totalorder %s21_s16, 4   ;;  %s1110_s10 = smov %s827_s11 }
 0x12b   : > { %s1111_s11 = smov %s924_s24  ;;  %s1112_s12 = smov %s835_s13 }
 0x12c   : > { %s1090_s13 = smov 0   ;;  %s1113_s14 = smov %s843_s15 }
 0x12d   : > { %s1114_s15 = smov %s1116_s19  ;;  %20 = sbr.rel (!%p18_p3) target bundleno = 9 (0x9), region = 96 }
 0x132   :  { %488 = vsyncpa [#allocation4], 1 }
 0x133   :  { %490 = vsyncpa [#allocation4 + $0x1], 1 }
 0x134   :  { %491 = vsyncpa [#allocation7], 1 }
 0x135   :  { %493 = vsyncpa [#allocation7 + $0x1], 1 }
 0x136   :  { %494 = vsyncpa [#allocation5], 1 }
 0x137   :  { %496 = vsyncpa [#allocation5 + $0x1], 1 }

</bundles_post_ra>
